<compile_context>
chip_gen: v6e
topology: v6e:2x2x1
jax: 0.10.0
libtpu: 0.0.40
codegen_flags: <defaults>
</compile_context>

<pallas_src>
import functools

import numpy as np
import jax
import jax.numpy as jnp
from jax.experimental import pallas as pl
from jax.experimental.pallas import tpu as pltpu

# Small, self-consistent configuration (the module default is frame_size=2048,
# taps=32; we shrink the frame for a quick synthetic run).
FRAME_SIZE = 256
SAMPLING_RATE = 48000
TAPS = 32
BATCH = 32
TILE_B = 16                                   # frames per grid step
K_BINS = FRAME_SIZE // 2 + 1                  # rfft bins = N//2 + 1 = 129
K_PAD = ((K_BINS + 127) // 128) * 128         # 256 (lane-dense)
T_PAD = ((TAPS + 127) // 128) * 128           # 128 (lane-dense)


def make_params():
    """Deterministic synthetic Detectability parameters (h, g, ca, cs, leff)."""
    # TODO(synk): synthetic h/g/ca/cs stand in for libdetectability's calibrated
    # gammatone filterbank + hearing-threshold constants (host-side precompute).
    k = np.arange(K_BINS, dtype=np.float64)
    # outer / middle-ear weighting g: (K,), smooth and positive
    g = np.exp(-((k / K_BINS - 0.3) ** 2) / 0.05) + 0.1
    # gammatone filterbank power responses h: (TAPS, K), positive bumps
    centers = (np.arange(TAPS, dtype=np.float64) + 1.0) / (TAPS + 1.0) * K_BINS
    h = np.exp(-0.5 * ((k[None, :] - centers[:, None]) / 4.0) ** 2)

    G = h * g[None, :]                                    # == self.G  (TAPS, K)
    leff = min(FRAME_SIZE / SAMPLING_RATE / 0.3, 1.0)
    cs = 2.0
    ca = 1e-3
    numer = cs * leff * h * g[None, :]                    # (TAPS, K)

    # real-DFT (torch.fft.rfft, norm='backward' -> unscaled) matrices, fused
    # as one (N, 2*K_PAD) [cos | -sin] matrix so the kernel needs a single
    # MXU weight push per tile.  Padded bins are all-zero columns (neutral).
    n = np.arange(FRAME_SIZE, dtype=np.float64)
    ang = 2.0 * np.pi * np.outer(n, k) / FRAME_SIZE       # (N, K_BINS)
    wdft = np.zeros((FRAME_SIZE, 2 * K_PAD), dtype=np.float64)
    wdft[:, :K_BINS] = np.cos(ang)
    wdft[:, K_PAD:K_PAD + K_BINS] = -np.sin(ang)

    # G^T padded to (K_PAD, T_PAD): zero pad-bin rows / pad-tap columns.
    gT_pad = np.zeros((K_PAD, T_PAD), dtype=np.float64)
    gT_pad[:K_BINS, :TAPS] = G.T
    # cs*leff*h*g padded to (T_PAD, K_PAD): zero pad-tap rows / pad-bin cols.
    numer_pad = np.zeros((T_PAD, K_PAD), dtype=np.float64)
    numer_pad[:TAPS, :K_BINS] = numer

    return dict(
        # bf16 DFT matrix: halves resident VMEM, single-pass MXU, f32 accum.
        wdft=jnp.asarray(wdft, jnp.bfloat16),             # (N, 2*K_PAD)
        gT_pad=jnp.asarray(gT_pad, jnp.float32),          # (K_PAD, T_PAD)
        numer_pad=jnp.asarray(numer_pad, jnp.float32),    # (T_PAD, K_PAD)
        # unpadded copies for the pure-JAX reference
        G=jnp.asarray(G, jnp.float32),                    # (TAPS, K)
        numer=jnp.asarray(numer, jnp.float32),            # (TAPS, K)
        ca=np.float32(ca),
    )


def detectability_kernel(ref_ref, tst_ref, wdft_ref, gT_ref, numer_ref,
                         out_ref, *, ca, tile_b, k_pad):
    """One batch tile (TILE_B frames): emits the partial sum of L1 norms."""
    ref = ref_ref[...]                                    # (tile_b, N) f32
    tst = tst_ref[...]                                    # (tile_b, N) f32

    # Residual in f32 (avoid cancellation), then cast once to bf16 and stack
    # with the (detached) test signal -> ONE fused DFT matmul for all four
    # real/imag spectra.  NOTE: torch uses test.detach() for the gain path;
    # forward values are identical (wrap in lax.stop_gradient if a VJP is
    # ever added).
    d = tst - ref
    stacked = jnp.concatenate([d, tst], axis=0).astype(jnp.bfloat16)  # (2B, N)

    spec = jnp.dot(stacked, wdft_ref[...],
                   preferred_element_type=jnp.float32)    # (2B, 2*K_PAD)
    re = spec[:, :k_pad]
    im = spec[:, k_pad:]
    sq = re * re + im * im                                # |rfft|^2, (2B, K_PAD)
    e_spec = sq[:tile_b, :]                               # _spectrum(test-ref)
    x_spec = sq[tile_b:, :]                               # _spectrum(test)

    # _masker_power_array: m[b,t] = sum_k x[b,k] * G[t,k]   (pad taps -> 0)
    m = jnp.dot(x_spec, gT_ref[...],
                preferred_element_type=jnp.float32)       # (tile_b, T_PAD)
    inv_den = pl.reciprocal(m + ca, approx=True)          # EUP slot

    # gain[b,k] = sqrt( sum_t (cs*leff*h*g)[t,k] / (m[b,t] + ca) )
    gain2 = jnp.dot(inv_den, numer_ref[...],
                    preferred_element_type=jnp.float32)   # (tile_b, K_PAD)
    gain = jnp.sqrt(gain2)                                # pad bins stay 0

    # _frame: L1 norm over bins; emit the partial sum for this tile
    # ('mean' reduction is finished in the wrapper).
    partial = jnp.sum(jnp.abs(gain * e_spec))
    out_ref[...] = partial.reshape(1, 1, 1)


def detectability_loss(reference, test, params):
    batch, frame = reference.shape
    assert frame == FRAME_SIZE and batch % TILE_B == 0
    num_tiles = batch // TILE_B

    kernel = functools.partial(
        detectability_kernel,
        ca=float(params["ca"]), tile_b=TILE_B, k_pad=K_PAD)

    partials = pl.pallas_call(
        kernel,
        out_shape=jax.ShapeDtypeStruct((num_tiles, 1, 1), jnp.float32),
        grid=(num_tiles,),
        in_specs=[
            pl.BlockSpec((TILE_B, FRAME_SIZE), lambda i: (i, 0)),      # reference
            pl.BlockSpec((TILE_B, FRAME_SIZE), lambda i: (i, 0)),      # test
            pl.BlockSpec((FRAME_SIZE, 2 * K_PAD), lambda i: (0, 0)),   # cos|sin (resident)
            pl.BlockSpec((K_PAD, T_PAD), lambda i: (0, 0)),            # G^T     (resident)
            pl.BlockSpec((T_PAD, K_PAD), lambda i: (0, 0)),            # cs*leff*h*g (resident)
        ],
        out_specs=pl.BlockSpec((1, 1, 1), lambda i: (i, 0, 0)),
        compiler_params=pltpu.CompilerParams(
            # batch axis is independent -> shards over v7x's 2 TensorCores
            dimension_semantics=("parallel",),
            # explicit scoped-VMEM budget; re-derive for v7x (64 MiB phys)
            # when scaling to the real frame_size=2048 / K=1025 config.
            vmem_limit_bytes=32 * 1024 * 1024,
        ),
    )(reference, test, params["wdft"], params["gT_pad"], params["numer_pad"])

    return jnp.sum(partials) / batch                      # reduction='mean'


def jax_reference_loss(reference, test, params):
    """Pure-JAX mirror of the PyTorch forward (uses jnp.fft.rfft, f32)."""
    ca = params["ca"]
    G = params["G"]
    numer = params["numer"]
    e = jnp.abs(jnp.fft.rfft(test - reference, axis=1)) ** 2.0
    x = jnp.abs(jnp.fft.rfft(test, axis=1)) ** 2.0
    m = jnp.sum(x[:, None, :] * G[None, :, :], axis=2)            # (B, TAPS)
    Gg = numer[None, :, :] / (m + ca)[:, :, None]                 # (B, TAPS, K)
    gain = jnp.sqrt(jnp.sum(Gg, axis=1))                          # (B, K)
    per_batch = jnp.sum(jnp.abs(gain * e), axis=1)                # L1, dim=1
    return jnp.mean(per_batch)                                    # reduction


if __name__ == "__main__":
    params = make_params()

    key = jax.random.PRNGKey(0)
    k_ref, k_noise = jax.random.split(key)
    reference = jax.random.normal(k_ref, (BATCH, FRAME_SIZE), dtype=jnp.float32)
    test = reference + 0.1 * jax.random.normal(
        k_noise, (BATCH, FRAME_SIZE), dtype=jnp.float32)

    loss = jax.block_until_ready(detectability_loss(reference, test, params))
    ref_loss = jax.block_until_ready(jax_reference_loss(reference, test, params))

    assert np.isfinite(float(loss))
    # bf16 MXU inputs with f32 accumulation + approx reciprocal: typical
    # relative error ~1e-3; 2e-2 gives comfortable headroom.
    np.testing.assert_allclose(float(loss), float(ref_loss), rtol=2e-2, atol=1e-3)

    print("KERNEL_OK")
</pallas_src>

<mosaic_0001>
module attributes {stable_mosaic.version = 11 : i64} {
  func.func @detectability_kernel(%arg0: i32, %arg1: memref<16x256xf32, #tpu.memory_space<vmem>>, %arg2: memref<16x256xf32, #tpu.memory_space<vmem>>, %arg3: memref<256x512xbf16, #tpu.memory_space<vmem>>, %arg4: memref<256x128xf32, #tpu.memory_space<vmem>>, %arg5: memref<128x256xf32, #tpu.memory_space<vmem>>, %arg6: memref<1x1x1xf32, #tpu.memory_space<vmem>>) attributes {dimension_semantics = [#tpu.dimension_semantics<parallel>], iteration_bounds = array<i64: 2>, scalar_prefetch = 0 : i64, scratch_operands = 0 : i64, tpu.core_type = #tpu.core_type<tc>, window_params = [{transform_indices = @transform_0, window_bounds = array<i64: 16, 256>}, {transform_indices = @transform_1, window_bounds = array<i64: 16, 256>}, {pipeline_mode = #tpu.pipeline_mode<synchronous>, transform_indices = @transform_2, window_bounds = array<i64: 256, 512>}, {pipeline_mode = #tpu.pipeline_mode<synchronous>, transform_indices = @transform_3, window_bounds = array<i64: 256, 128>}, {pipeline_mode = #tpu.pipeline_mode<synchronous>, transform_indices = @transform_4, window_bounds = array<i64: 128, 256>}, {transform_indices = @transform_5, window_bounds = array<i64: 1, 1, 1>}]} {
    %c0 = arith.constant 0 : index
    %c0_0 = arith.constant 0 : index
    %0 = vector.load %arg1[%c0, %c0_0] : memref<16x256xf32, #tpu.memory_space<vmem>>, vector<16x256xf32>
    %c0_1 = arith.constant 0 : index
    %c0_2 = arith.constant 0 : index
    %1 = vector.load %arg2[%c0_1, %c0_2] : memref<16x256xf32, #tpu.memory_space<vmem>>, vector<16x256xf32>
    %2 = arith.subf %1, %0 : vector<16x256xf32>
    %3 = tpu.concatenate %2, %1 in 0 : vector<16x256xf32>, vector<16x256xf32> -> vector<32x256xf32>
    %4 = arith.truncf %3 : vector<32x256xf32> to vector<32x256xbf16>
    %c0_3 = arith.constant 0 : index
    %c0_4 = arith.constant 0 : index
    %5 = vector.load %arg3[%c0_3, %c0_4] : memref<256x512xbf16, #tpu.memory_space<vmem>>, vector<256x512xbf16>
    %cst = arith.constant dense<0.000000e+00> : vector<32x512xf32>
    %6 = tpu.matmul %4, %5, %cst {dimension_numbers = #tpu.dot_dimension_numbers<[1], [0], [0], [1], [0, 0, 1, 1], [], []>} : vector<32x256xbf16>, vector<256x512xbf16>, vector<32x512xf32> -> vector<32x512xf32>
    %7 = vector.extract_strided_slice %6 {offsets = [0, 0], sizes = [32, 256], strides = [1, 1]} : vector<32x512xf32> to vector<32x256xf32>
    %8 = vector.extract_strided_slice %6 {offsets = [0, 256], sizes = [32, 256], strides = [1, 1]} : vector<32x512xf32> to vector<32x256xf32>
    %9 = arith.mulf %7, %7 : vector<32x256xf32>
    %10 = arith.mulf %8, %8 : vector<32x256xf32>
    %11 = arith.addf %9, %10 : vector<32x256xf32>
    %12 = vector.extract_strided_slice %11 {offsets = [0, 0], sizes = [16, 256], strides = [1, 1]} : vector<32x256xf32> to vector<16x256xf32>
    %13 = vector.extract_strided_slice %11 {offsets = [16, 0], sizes = [16, 256], strides = [1, 1]} : vector<32x256xf32> to vector<16x256xf32>
    %c0_5 = arith.constant 0 : index
    %c0_6 = arith.constant 0 : index
    %14 = vector.load %arg4[%c0_5, %c0_6] : memref<256x128xf32, #tpu.memory_space<vmem>>, vector<256x128xf32>
    %cst_7 = arith.constant dense<0.000000e+00> : vector<16x128xf32>
    %15 = tpu.matmul %13, %14, %cst_7 {dimension_numbers = #tpu.dot_dimension_numbers<[1], [0], [0], [1], [0, 0, 1, 1], [], []>} : vector<16x256xf32>, vector<256x128xf32>, vector<16x128xf32> -> vector<16x128xf32>
    %cst_8 = arith.constant 1.000000e-03 : f32
    %16 = vector.broadcast %cst_8 : f32 to vector<16x128xf32>
    %17 = arith.addf %15, %16 : vector<16x128xf32>
    %18 = tpu.reciprocal %17 {approx = true} : vector<16x128xf32> -> vector<16x128xf32>
    %c0_9 = arith.constant 0 : index
    %c0_10 = arith.constant 0 : index
    %19 = vector.load %arg5[%c0_9, %c0_10] : memref<128x256xf32, #tpu.memory_space<vmem>>, vector<128x256xf32>
    %cst_11 = arith.constant dense<0.000000e+00> : vector<16x256xf32>
    %20 = tpu.matmul %18, %19, %cst_11 {dimension_numbers = #tpu.dot_dimension_numbers<[1], [0], [0], [1], [0, 0, 1, 1], [], []>} : vector<16x128xf32>, vector<128x256xf32>, vector<16x256xf32> -> vector<16x256xf32>
    %21 = math.sqrt %20 : vector<16x256xf32>
    %22 = arith.mulf %21, %12 : vector<16x256xf32>
    %23 = math.absf %22 : vector<16x256xf32>
    %24 = vector.shape_cast %23 : vector<16x256xf32> to vector<1x16x256xf32>
    %cst_12 = arith.constant dense<0.000000e+00> : vector<1xf32>
    %25 = vector.multi_reduction <add>, %24, %cst_12 [1, 2] : vector<1x16x256xf32> to vector<1xf32>
    %26 = vector.shape_cast %25 : vector<1xf32> to vector<1x1x1xf32>
    %27 = vector.extract %26[0, 0, 0] : f32 from vector<1x1x1xf32>
    %28 = vector.broadcast %27 : f32 to vector<1x1x1xf32>
    %c0_13 = arith.constant 0 : index
    %c0_14 = arith.constant 0 : index
    %c0_15 = arith.constant 0 : index
    %29 = vector.load %arg6[%c0_13, %c0_14, %c0_15] : memref<1x1x1xf32, #tpu.memory_space<vmem>>, vector<1x1x1xf32>
    tpu.vector_store %arg6[%c0_13, %c0_14, %c0_15], %28 {strides = array<i32>} : memref<1x1x1xf32, #tpu.memory_space<vmem>>, vector<1x1x1xf32>,
    return
  }
  func.func @transform_0(%arg0: i32) -> (i32, i32) {
    %c0_i32 = arith.constant 0 : i32
    %c0_i32_0 = arith.constant 0 : i32
    return %arg0, %c0_i32 : i32, i32
  }
  func.func @transform_1(%arg0: i32) -> (i32, i32) {
    %c0_i32 = arith.constant 0 : i32
    %c0_i32_0 = arith.constant 0 : i32
    return %arg0, %c0_i32 : i32, i32
  }
  func.func @transform_2(%arg0: i32) -> (i32, i32) {
    %c0_i32 = arith.constant 0 : i32
    %c0_i32_0 = arith.constant 0 : i32
    %c0_i32_1 = arith.constant 0 : i32
    return %c0_i32, %c0_i32_0 : i32, i32
  }
  func.func @transform_3(%arg0: i32) -> (i32, i32) {
    %c0_i32 = arith.constant 0 : i32
    %c0_i32_0 = arith.constant 0 : i32
    %c0_i32_1 = arith.constant 0 : i32
    return %c0_i32, %c0_i32_0 : i32, i32
  }
  func.func @transform_4(%arg0: i32) -> (i32, i32) {
    %c0_i32 = arith.constant 0 : i32
    %c0_i32_0 = arith.constant 0 : i32
    %c0_i32_1 = arith.constant 0 : i32
    return %c0_i32, %c0_i32_0 : i32, i32
  }
  func.func @transform_5(%arg0: i32) -> (i32, i32, i32) {
    %c0_i32 = arith.constant 0 : i32
    %c0_i32_0 = arith.constant 0 : i32
    %c0_i32_1 = arith.constant 0 : i32
    return %arg0, %c0_i32, %c0_i32_0 : i32, i32, i32
  }
}

</mosaic_0001>

<bundles_post_ra>
// kernel: tpu_custom_call.1
= control target key start
LH: loop header
LB: loop body
LE: loop exit
PB: predicated region body
PF: predicated region fallthrough
CT: control target
= control target key end

     0   :  { %10 = vsyncpa [#allocation3], 0  ;;  %s2006_s0 = inlined_call_operand.hbm [shape: f32[32,256], index: 0, kind: input, shape index: {}]   ;;  %s2007_s1 = inlined_call_operand.hbm [shape: f32[32,256], index: 1, kind: input, shape index: {}]   ;;  %s2008_s2 = inlined_call_operand.hbm [shape: bf16[256,512], index: 2, kind: input, shape index: {}]   ;;  %s2009_s3 = inlined_call_operand.hbm [shape: f32[256,128], index: 3, kind: input, shape index: {}]   ;;  %s2010_s4 = inlined_call_operand.hbm [shape: f32[128,256], index: 4, kind: input, shape index: {}]   ;;  %s2011_s5 = inlined_call_operand.vmem [shape: f32[2,1,1], index: 5, kind: output, shape index: {}]  }
   0x1   :  { %12 = vsyncpa [#allocation3 + $0x1], 0 }
   0x2   :  { %13 = vsyncpa [#allocation5], 0 }
   0x3   :  { %15 = vsyncpa [#allocation5 + $0x1], 0 }
   0x4   :  { %16 = vsyncpa [#allocation8], 0  ;;  %s1777_s18 = smov 0   ;;  %s1779_s19 = smov 0  }
   0x5   :  { %s1781_s20 = smov 0   ;;  %s1783_s21 = smov 0  }
   0x6 LB: > { %s1796_s22 = sadd.s32 4294967295, %s1735_s21   ;;  %p42_p0 = scmp.ne.s32.totalorder %s1727_s19, %s1723_s18  ;;  %s1735_s21 = sphi %s1783_s21, %s2026_s21   ;;  %s1731_s20 = sphi %s1781_s20, %s2025_s20   ;;  %s1727_s19 = sphi %s1779_s19, %s2024_s19   ;;  %s1723_s18 = sphi %s1777_s18, %s2023_s18  }
   0x7   : > { %p2012_p1 = scmp.eq.s32.totalorder %s1796_s22, 0  ;;  %p1238_p2 = scmp.ge.s32.totalorder %s1735_s21, 1 }
   0x8   : > { %p168_p3 = scmp.lt.s32.totalorder %s1735_s21, 3  ;;  %s1737_s25 = smov [#allocation6]  }
   0x9   : > { %p1804_p4 = por %p2012_p1, %p42_p0  ;;  %s180_s26 = sshll.u32 %s1737_s25, 4  ;;  %s181_s26 = int_to_ptr.vmem [resolvable:$true] %s180_s26 }
   0xa   : > { %p1808_p5 = pnand %p1238_p2, %p168_p3  ;;  %s1738_s28 = smov [#allocation7]  }
   0xb   : > { %s2014_s23 = scalar_select %p1804_p4, 1, 0 }
   0xc   : > { %p1383_p6 = pneg %p1808_p5  ;;  %s193_s29 = sshll.u32 %s1738_s28, 4  ;;  %s194_s29 = int_to_ptr.vmem [resolvable:$true] %s193_s29 }
   0xd   : > { %s1566_s30 = scalar_lea.vmem %s181_s26, 8192  ;;  %p1574_p12 = scmp.lt.s32.totalorder %s181_s26, %s181_s26 }
   0xe   : > { %p1816_p7 = pnand %p1383_p6, %p2012_p1  ;;  %p1567_p9 = scmp.ne.s32.totalorder %s181_s26, %s1566_s30 }
   0xf   : > { %p1575_p13 = scmp.lt.s32.totalorder %s1566_s30, %s1566_s30 }
  0x10   : > { %p1557_p8 = pneg %p1816_p7 }
  0x11   : > { %p1576_p0 = por %p1575_p13, %p1574_p12 }
  0x12   : > { %p1569_p10 = pnand %p1567_p9, %p1557_p8 }
  0x14   : > { %p1570_p11 = pneg %p1569_p10 }
  0x16   : > { %p1577_p2 = pnand %p1576_p0, %p1570_p11 }
  0x18   : > { %1580 = shalt.err (!%p1577_p2)
}
  0x19   : > { %s1739_s6 = smov 256   ;;  %s1740_s7 = smov 16  }
  0x1a   : > { %1386 = dma.hbm_to_vmem [thread:$0]  (!%p1816_p7), %s2008_s2, 8192, %s181_s26, [#allocation5], %s1739_s6, %s1739_s6, %s1740_s7  }
  0x1b   : > { %s1592_s10 = scalar_lea.vmem %s194_s29, 4096  ;;  %p1600_p10 = scmp.lt.s32.totalorder %s194_s29, %s194_s29 }
  0x1c   : > { %p1593_p3 = scmp.ne.s32.totalorder %s194_s29, %s1592_s10  ;;  %p1601_p11 = scmp.lt.s32.totalorder %s1592_s10, %s1592_s10 }
  0x1e   : > { %p1595_p6 = pnand %p1593_p3, %p1557_p8  ;;  %p1602_p12 = por %p1601_p11, %p1600_p10 }
  0x20   : > { %p1596_p9 = pneg %p1595_p6 }
  0x22   : > { %p1603_p13 = pnand %p1602_p12, %p1596_p9 }
  0x24   : > { %1606 = shalt.err (!%p1603_p13)
}
  0x25   : > { %s1741_s11 = smov 128   ;;  %s1742_s12 = smov 8  }
  0x26   : > { %1389 = dma.hbm_to_vmem [thread:$0]  (!%p1816_p7), %s2009_s3, 4096, %s194_s29, [#allocation8], %s1741_s11, %s1741_s11, %s1742_s12  }
  0x27   : > { %s1743_s15 = smov [#allocation9]   ;;  %s1842_s17 = sadd.s32 1, %s1735_s21  }
  0x28   : > { %s206_s16 = sshll.u32 %s1743_s15, 4  ;;  %s207_s16 = int_to_ptr.vmem [resolvable:$true] %s206_s16 }
  0x29   : > { %s1618_s18 = scalar_lea.vmem %s207_s16, 4096  ;;  %p1626_p6 = scmp.lt.s32.totalorder %s207_s16, %s207_s16 }
  0x2a   : > { %p1619_p0 = scmp.ne.s32.totalorder %s207_s16, %s1618_s18  ;;  %p1627_p9 = scmp.lt.s32.totalorder %s1618_s18, %s1618_s18 }
  0x2c   : > { %p1621_p2 = pnand %p1619_p0, %p1557_p8  ;;  %p1628_p10 = por %p1627_p9, %p1626_p6 }
  0x2e   : > { %p1622_p3 = pneg %p1621_p2 }
  0x30   : > { %p1629_p11 = pnand %p1628_p10, %p1622_p3 }
  0x32   : > { %1632 = shalt.err (!%p1629_p11)
}
  0x33   : > { %1392 = dma.hbm_to_vmem [thread:$0]  (!%p1816_p7), %s2010_s4, 4096, %s207_s16, [#allocation8], %s1739_s6, %s1739_s6, %s1740_s7  }
  0x34   : > { %s26_s28 = ssub.s32 %s1735_s21, %s1842_s17  ;;  %s29_s29 = sadd.s32 1, %s1731_s20 }
  0x35   : > { %p27_p8 = scmp.eq.s32.totalorder %s26_s28, 0  ;;  %p36_p12 = scmp.ne.s32.totalorder %s1731_s20, %s1727_s19 }
  0x36   : > { %p37_p13 = scmp.eq.s32.totalorder %s1735_s21, 0  ;;  %p1403_p0 = scmp.lt.s32.totalorder %s1735_s21, 2 }
  0x37   : > { %s1863_s27 = scalar_select %p27_p8, %s1731_s20, %s29_s29  }
  0x38   : > { %p38_p2 = por %p37_p13, %p36_p12  ;;  %s220_s30 = sand.u32 1, %s1731_s20  }
  0x39   : > { %s1243_s8 = sshll.u32 %s220_s30, 5  ;;  %s1324_s9 = sshll.u32 %s1735_s21, 9 }
  0x3a   : > { %s1870_s12 = scalar_lea.hbm %s2006_s0, %s1324_s9  ;;  %s224_s13 = scalar_lea.vmem [#allocation2], %s1243_s8 }
  0x3b   : > { %s232_s14 = sshll.u32 %s224_s13, 4  ;;  %p1874_p7 = pnand %p1403_p0, %p38_p2  ;;  %s1872_s14 = int_to_ptr.vmem [resolvable:$true] %s232_s14 }
  0x3c   : > { %s1881_s25 = scalar_lea.hbm %s2007_s1, %s1324_s9  ;;  %s246_s26 = scalar_lea.vmem [#allocation4], %s1243_s8 }
  0x3d   : > { %s1883_s28 = sshll.u32 %s246_s26, 4  ;;  %s1885_s29 = scalar_lea.sflag [#allocation3], %s220_s30  ;;  %s1916_s28 = int_to_ptr.vmem [resolvable:$true] %s1883_s28 }
  0x3e   : > { %s1633_s10 = scalar_lea.hbm %s1870_s12, 512  ;;  %p1635_p6 = pneg %p1874_p7 }
  0x3f   : > { %p1634_p3 = scmp.ne.s32.totalorder %s1870_s12, %s1633_s10  ;;  %s1638_s16 = scalar_lea.hbm %s2006_s0, 1024 }
  0x40   : > { %p1639_p11 = scmp.lt.s32.totalorder %s1870_s12, %s2006_s0  ;;  %p1640_p8 = scmp.lt.s32.totalorder %s1638_s16, %s1633_s10 }
  0x41   : > { %p1636_p9 = pnand %p1635_p6, %p1634_p3 }
  0x42   : > { %p1641_p12 = por %p1640_p8, %p1639_p11 }
  0x43   : > { %p1637_p10 = pneg %p1636_p9 }
  0x45   : > { %p1642_p13 = pnand %p1641_p12, %p1637_p10 }
  0x47   : > { %1645 = shalt.err (!%p1642_p13)
}
  0x48   : > { %s1646_s30 = scalar_lea.vmem %s1872_s14, 512  ;;  %s1744_s8 = smov [#allocation2]  }
  0x49   : > { %p1647_p0 = scmp.ne.s32.totalorder %s1872_s14, %s1646_s30  ;;  %s1651_s26 = sshll.u32 %s1744_s8, 4  ;;  %s1652_s26 = int_to_ptr.vmem [resolvable:$false] %s1651_s26 }
  0x4a   : > { %s1653_s11 = scalar_lea.vmem %s1652_s26, 1024  ;;  %p1654_p9 = scmp.lt.s32.totalorder %s1872_s14, %s1652_s26 }
  0x4b   : > { %p1649_p2 = pnand %p1647_p0, %p1635_p6  ;;  %p1655_p1 = scmp.lt.s32.totalorder %s1653_s11, %s1646_s30 }
  0x4d   : > { %p1650_p3 = pneg %p1649_p2  ;;  %p1656_p4 = por %p1655_p1, %p1654_p9 }
  0x4f   : > { %p1657_p11 = pnand %p1656_p4, %p1650_p3 }
  0x51   : > { %1660 = shalt.err (!%p1657_p11)
}
  0x52   : > { %1396 = dma.hbm_to_vmem [thread:$0]  (!%p1874_p7), %s1870_s12, 512, %s1872_s14, %s1885_s29, %s1739_s6, %s1739_s6, %s1740_s7  }
  0x53   : > { %s242_s10 = sand.u32 1, %s1735_s21   ;;  %s1661_s16 = scalar_lea.hbm %s1881_s25, 512 }
  0x54   : > { %s243_s13 = scalar_lea.sflag [#allocation5], %s242_s10  ;;  %p1662_p1 = scmp.ne.s32.totalorder %s1881_s25, %s1661_s16 }
  0x55   : > { %s1666_s30 = scalar_lea.hbm %s2007_s1, 1024  ;;  %p1667_p8 = scmp.lt.s32.totalorder %s1881_s25, %s2007_s1 }
  0x56   : > { %p1664_p4 = pnand %p1662_p1, %p1635_p6  ;;  %p1668_p12 = scmp.lt.s32.totalorder %s1666_s30, %s1661_s16 }
  0x58   : > { %p1665_p10 = pneg %p1664_p4  ;;  %p1669_p13 = por %p1668_p12, %p1667_p8 }
  0x5a   : > { %p1670_p0 = pnand %p1669_p13, %p1665_p10 }
  0x5c   : > { %1673 = shalt.err (!%p1670_p0)
}
  0x5d   : > { %s1674_s21 = scalar_lea.vmem %s1916_s28, 512  ;;  %s1745_s12 = smov [#allocation4]  }
  0x5e   : > { %p1675_p2 = scmp.ne.s32.totalorder %s1916_s28, %s1674_s21  ;;  %s1679_s14 = sshll.u32 %s1745_s12, 4  ;;  %s1680_s14 = int_to_ptr.vmem [resolvable:$false] %s1679_s14 }
  0x5f   : > { %s1681_s29 = scalar_lea.vmem %s1680_s14, 1024  ;;  %p1682_p11 = scmp.lt.s32.totalorder %s1916_s28, %s1680_s14 }
  0x60   : > { %p1677_p3 = pnand %p1675_p2, %p1635_p6  ;;  %p1683_p1 = scmp.lt.s32.totalorder %s1681_s29, %s1674_s21 }
  0x62   : > { %p1678_p9 = pneg %p1677_p3  ;;  %p1684_p4 = por %p1683_p1, %p1682_p11 }
  0x64   : > { %p1685_p8 = pnand %p1684_p4, %p1678_p9 }
  0x66   : > { %1688 = shalt.err (!%p1685_p8)
}
  0x67   : > { %1399 = dma.hbm_to_vmem [thread:$0]  (!%p1874_p7), %s1881_s25, 512, %s1916_s28, %s243_s13, %s1739_s6, %s1739_s6, %s1740_s7  }
  0x68   : > { %266 = sbr.rel (%p1808_p5) target bundleno = 1030 (0x406), region = 40  ;;  %s268_s11 = sand.u32 (!%p1808_p5), 1, %s1727_s19  }
  0x69   : > { %s1252_s10 = sshll.u32 (!%p1808_p5), %s268_s11, 5  ;;  %s269_s16 = scalar_lea.sflag (!%p1808_p5), [#allocation3], %s268_s11 }
  0x6a   : > { %s1947_s18 = scalar_lea.vmem (!%p1808_p5), [#allocation2], %s1252_s10  ;;  %p2018_p6 = scmp.ne.s32.totalorder (!%p1808_p5), %s2014_s23, 0 }
  0x6d   : > { %1706 = dma.done.wait (%p2018_p6), %s269_s16, 512  }
  0x6e   : > { %1708 = vsyncadd (%p2018_p6), %s269_s16, 4294966784  ;;  %s277_s15 = sand.u32 1, %s1796_s22   ;;  %s1954_s6 = scalar_lea.vmem [#allocation4], %s1252_s10 }
  0x6f   : > { %s278_s9 = scalar_lea.sflag [#allocation5], %s277_s15 }
  0x70   : > { %1710 = dma.done.wait (%p2018_p6), %s278_s9, 512  }
  0x71   : > { %1712 = vsyncadd (%p2018_p6), %s278_s9, 4294966784  ;;  %p2019_p5 = scmp.eq.s32.totalorder %s1796_s22, 0 }
  0x73   : > { %1714 = dma.done.wait (%p2019_p5), [#allocation5], 8192   ;;  %p2020_p7 = pmov %p2019_p5 }
  0x74   : > { %p2021_p10 = pmov %p2019_p5 }
  0x75   : > { %1716 = vsyncadd (%p2020_p7), [#allocation5], 4294959104 }
  0x76   : > { %1718 = dma.done.wait (%p2021_p10), [#allocation8], 8192   ;;  %p2022_p12 = pmov %p2019_p5 }
  0x77   : > { %v1447_v0 = vld [vmem:[#allocation6 + $0xe4] ss:$16 sps:$4 sm:$0xff]   ;;  %v1449_v1 = vld [vmem:[#allocation6 + $0xec] ss:$16 sps:$4 sm:$0xff]   ;;  %v1451_v2 = vld [vmem:[#allocation6 + $0xe0] ss:$16 sps:$4 sm:$0xff]  }
  0x78   : > { %1720 = vsyncadd (%p2022_p12), [#allocation8], 4294959104  ;;  %728 = vmatprep.subr.bf16.mxu0 %v1447_v0  ;;  %v1452_v3 = vld [vmem:[#allocation6 + $0xe8] ss:$16 sps:$4 sm:$0xff]   ;;  %781 = vmatprep.subr.bf16.mxu1 %v1449_v1  ;;  %v1453_v4 = vld [vmem:[#allocation6 + $0xc4] ss:$16 sps:$4 sm:$0xff]  }
  0x79   : > { %729 = vmatpush1.bf16.msra.mxu0 %v1451_v2  ;;  %782 = vmatpush1.bf16.msra.mxu1 %v1452_v3  ;;  %v1455_v5 = vld [vmem:[#allocation6 + $0xcc] ss:$16 sps:$4 sm:$0xff]   ;;  %v1457_v6 = vld [vmem:[#allocation6 + $0xc0] ss:$16 sps:$4 sm:$0xff]   ;;  %v1458_v7 = vld [vmem:[#allocation6 + $0xc8] ss:$16 sps:$4 sm:$0xff]  }
  0x7a   : > { %730 = vmatprep.subr.bf16.mxu0 %v1453_v4  ;;  %783 = vmatprep.subr.bf16.mxu1 %v1455_v5  ;;  %v1459_v8 = vld [vmem:[#allocation6 + $0xa4] ss:$16 sps:$4 sm:$0xff]   ;;  %v1461_v9 = vld [vmem:[#allocation6 + $0xac] ss:$16 sps:$4 sm:$0xff]   ;;  %v1463_v10 = vld [vmem:[#allocation6 + $0xa0] ss:$16 sps:$4 sm:$0xff]  }
  0x7b   : > { %v1464_v11 = vld [vmem:[#allocation6 + $0xa8] ss:$16 sps:$4 sm:$0xff]   ;;  %v1465_v12 = vld [vmem:[#allocation6 + $0x84] ss:$16 sps:$4 sm:$0xff]   ;;  %v1467_v13 = vld [vmem:[#allocation6 + $0x8c] ss:$16 sps:$4 sm:$0xff]  }
  0x7c   : > { %v1469_v14 = vld [vmem:[#allocation6 + $0x80] ss:$16 sps:$4 sm:$0xff]   ;;  %v1470_v15 = vld [vmem:[#allocation6 + $0x88] ss:$16 sps:$4 sm:$0xff]   ;;  %v1471_v16 = vld [vmem:[#allocation6 + $0x64] ss:$16 sps:$4 sm:$0xff]  }
  0x7d   : > { %731 = vmatpush1.bf16.msra.mxu0 %v1457_v6  ;;  %784 = vmatpush1.bf16.msra.mxu1 %v1458_v7  ;;  %v1473_v17 = vld [vmem:[#allocation6 + $0x6c] ss:$16 sps:$4 sm:$0xff]   ;;  %v1475_v18 = vld [vmem:[#allocation6 + $0x60] ss:$16 sps:$4 sm:$0xff]   ;;  %v1476_v19 = vld [vmem:[#allocation6 + $0x68] ss:$16 sps:$4 sm:$0xff]  }
  0x7e   : > { %732 = vmatprep.subr.bf16.mxu0 %v1459_v8  ;;  %785 = vmatprep.subr.bf16.mxu1 %v1461_v9  ;;  %v1477_v20 = vld [vmem:[#allocation6 + $0x44] ss:$16 sps:$4 sm:$0xff]   ;;  %v1479_v21 = vld [vmem:[#allocation6 + $0x4c] ss:$16 sps:$4 sm:$0xff]   ;;  %v1481_v22 = vld [vmem:[#allocation6 + $0x40] ss:$16 sps:$4 sm:$0xff]  }
  0x7f   : > { %v1482_v23 = vld [vmem:[#allocation6 + $0x48] ss:$16 sps:$4 sm:$0xff]   ;;  %v1483_v24 = vld [vmem:[#allocation6 + $0x24] ss:$16 sps:$4 sm:$0xff]   ;;  %v1485_v25 = vld [vmem:[#allocation6 + $0x2c] ss:$16 sps:$4 sm:$0xff]  }
  0x80   : > { %v1487_v26 = vld [vmem:[#allocation6 + $0x20] ss:$16 sps:$4 sm:$0xff]   ;;  %v1488_v27 = vld [vmem:[#allocation6 + $0x28] ss:$16 sps:$4 sm:$0xff]   ;;  %v1489_v28 = vld [vmem:[#allocation6 + $0x4] ss:$16 sps:$4 sm:$0xff]  }
  0x81   : > { %733 = vmatpush1.bf16.msra.mxu0 %v1463_v10  ;;  %786 = vmatpush1.bf16.msra.mxu1 %v1464_v11  ;;  %v1491_v29 = vld [vmem:[#allocation6 + $0xc] ss:$16 sps:$4 sm:$0xff]   ;;  %v1493_v30 = vld [vmem:[#allocation6] ss:$16 sps:$4 sm:$0xff]   ;;  %v1494_v31 = vld [vmem:[#allocation6 + $0x8] ss:$16 sps:$4 sm:$0xff]  }
  0x82   : > { %734 = vmatprep.subr.bf16.mxu0 %v1465_v12  ;;  %787 = vmatprep.subr.bf16.mxu1 %v1467_v13  ;;  %v1495_v32 = vld [vmem:[#allocation6 + $0x1e4] ss:$16 sps:$4 sm:$0xff]   ;;  %v1497_v33 = vld [vmem:[#allocation6 + $0x1ec] ss:$16 sps:$4 sm:$0xff]   ;;  %v1499_v34 = vld [vmem:[#allocation6 + $0x1e0] ss:$16 sps:$4 sm:$0xff]  }
  0x83   : > { %v1500_v35 = vld [vmem:[#allocation6 + $0x1e8] ss:$16 sps:$4 sm:$0xff]   ;;  %v1501_v36 = vld [vmem:[#allocation6 + $0x1c4] ss:$16 sps:$4 sm:$0xff]   ;;  %v1503_v37 = vld [vmem:[#allocation6 + $0x1cc] ss:$16 sps:$4 sm:$0xff]  }
  0x84   : > { %v1505_v38 = vld [vmem:[#allocation6 + $0x1c0] ss:$16 sps:$4 sm:$0xff]   ;;  %v1506_v39 = vld [vmem:[#allocation6 + $0x1c8] ss:$16 sps:$4 sm:$0xff]   ;;  %v1507_v40 = vld [vmem:[#allocation6 + $0x1a4] ss:$16 sps:$4 sm:$0xff]  }
  0x85   : > { %735 = vmatpush1.bf16.msra.mxu0 %v1469_v14  ;;  %788 = vmatpush1.bf16.msra.mxu1 %v1470_v15  ;;  %v1509_v41 = vld [vmem:[#allocation6 + $0x1ac] ss:$16 sps:$4 sm:$0xff]   ;;  %v1511_v42 = vld [vmem:[#allocation6 + $0x1a0] ss:$16 sps:$4 sm:$0xff]   ;;  %v1512_v43 = vld [vmem:[#allocation6 + $0x1a8] ss:$16 sps:$4 sm:$0xff]  }
  0x86   : > { %736 = vmatprep.subr.bf16.mxu0 %v1471_v16  ;;  %789 = vmatprep.subr.bf16.mxu1 %v1473_v17  ;;  %v1513_v44 = vld [vmem:[#allocation6 + $0x184] ss:$16 sps:$4 sm:$0xff]   ;;  %v1515_v45 = vld [vmem:[#allocation6 + $0x18c] ss:$16 sps:$4 sm:$0xff]   ;;  %v1517_v50 = vld [vmem:[#allocation6 + $0x180] ss:$16 sps:$4 sm:$0xff]  }
  0x87   : > { %v329_v46 = vld [vmem:[%s1947_s18 + $0x8] sm:$0xff]  ;;  %v331_v47 = vld [vmem:[%s1947_s18 + $0x18] sm:$0xff]  ;;  %v1519_v54 = vld [vmem:[#allocation6 + $0x164] ss:$16 sps:$4 sm:$0xff]   ;;  %p325_p13 = scmp.lt.s32.totalorder %s1796_s22, 1  ;;  %vm1125_vm8 = vcmask 0  }
  0x88   : > { %v333_v48 = vld [vmem:[%s1954_s6 + $0x8] sm:$0xff]  ;;  %v335_v49 = vld [vmem:[%s1954_s6 + $0x18] sm:$0xff]  ;;  %v1523_v57 = vld [vmem:[#allocation6 + $0x160] ss:$16 sps:$4 sm:$0xff]  }
  0x89   : > { %737 = vmatpush1.bf16.msra.mxu0 %v1475_v18  ;;  %790 = vmatpush1.bf16.msra.mxu1 %v1476_v19  ;;  %v1518_v51 = vld [vmem:[#allocation6 + $0x188] ss:$16 sps:$4 sm:$0xff]   ;;  %v337_v52 = vsub.f32 %v333_v48, %v329_v46  ;;  %v339_v53 = vsub.f32 %v335_v49, %v331_v47  ;;  %v1521_v55 = vld [vmem:[#allocation6 + $0x16c] ss:$16 sps:$4 sm:$0xff]   ;;  %v1525_v59 = vld [vmem:[#allocation6 + $0x144] ss:$16 sps:$4 sm:$0xff]   ;;  %v343_v15 = vpack.c.bf16 %v335_v49, %v333_v48 }
  0x8a   : > { %738 = vmatprep.subr.bf16.mxu0 %v1477_v20  ;;  %791 = vmatprep.subr.bf16.mxu1 %v1479_v21  ;;  %v1524_v58 = vld [vmem:[#allocation6 + $0x168] ss:$16 sps:$4 sm:$0xff]   ;;  %v1527_v60 = vld [vmem:[#allocation6 + $0x14c] ss:$16 sps:$4 sm:$0xff]   ;;  %v1529_v61 = vld [vmem:[#allocation6 + $0x140] ss:$16 sps:$4 sm:$0xff]  }
  0x8b   : > { %v341_v56 = vpack.c.bf16 %v339_v53, %v337_v52  ;;  %v1530_v62 = vld [vmem:[#allocation6 + $0x148] ss:$16 sps:$4 sm:$0xff]   ;;  %v1531_v63 = vld [vmem:[#allocation6 + $0x124] ss:$16 sps:$4 sm:$0xff]   ;;  %v1533_v0 = vld [vmem:[#allocation6 + $0x12c] ss:$16 sps:$4 sm:$0xff]  }
  0x8c   : > { %v1535_v1 = vld [vmem:[#allocation6 + $0x120] ss:$16 sps:$4 sm:$0xff]   ;;  %v1536_v2 = vld [vmem:[#allocation6 + $0x128] ss:$16 sps:$4 sm:$0xff]   ;;  %v1537_v7 = vld [vmem:[#allocation6 + $0x104] ss:$16 sps:$4 sm:$0xff]  }
  0x8d   : > { %739 = vmatpush1.bf16.msra.mxu0 %v1481_v22  ;;  %792 = vmatpush1.bf16.msra.mxu1 %v1482_v23  ;;  %v328_v3 = vld [vmem:[%s1947_s18] sm:$0xff]  ;;  %v330_v4 = vld [vmem:[%s1947_s18 + $0x10] sm:$0xff]  ;;  %v1539_v8 = vld [vmem:[#allocation6 + $0x10c] ss:$16 sps:$4 sm:$0xff]   ;;  %s2028_s22 = smov (!%p325_p13, %s1796_s22), 1 }
  0x8e   : > { %740 = vmatprep.subr.bf16.mxu0 %v1483_v24  ;;  %793 = vmatprep.subr.bf16.mxu1 %v1485_v25  ;;  %v332_v5 = vld [vmem:[%s1954_s6] sm:$0xff]  ;;  %v334_v6 = vld [vmem:[%s1954_s6 + $0x10] sm:$0xff]  ;;  %v1542_v12 = vld [vmem:[#allocation6 + $0x108] ss:$16 sps:$4 sm:$0xff]   ;;  %s327_s7 = scalar_lea.vmem %s2011_s5, %s2028_s22 }
  0x8f   : > { %760 = vmatprep.mubr.bf16.mxu0 %v341_v56  ;;  %813 = vmatprep.mubr.bf16.mxu1 %v341_v56  ;;  %v336_v9 = vsub.f32 %v332_v5, %v328_v3  ;;  %v338_v10 = vsub.f32 %v334_v6, %v330_v4  ;;  %v1541_v11 = vld [vmem:[#allocation6 + $0x100] ss:$16 sps:$4 sm:$0xff]   ;;  %v889_v13 = vld [vmem:[#allocation7 + $0xf8] sm:$0xff]  ;;  %v887_v19 = vld [vmem:[#allocation7 + $0xe8] sm:$0xff]  ;;  %v342_v21 = vpack.c.bf16 %v334_v6, %v332_v5 }
  0x90   : > { %v873_v16 = vld [vmem:[#allocation7 + $0x78] sm:$0xff]  ;;  %v888_v17 = vld [vmem:[#allocation7 + $0xf0] sm:$0xff]  ;;  %v871_v20 = vld [vmem:[#allocation7 + $0x68] sm:$0xff] }
  0x91   : > { %741 = vmatpush1.bf16.msra.mxu0 %v1487_v26  ;;  %794 = vmatpush1.bf16.msra.mxu1 %v1488_v27  ;;  %v340_v14 = vpack.c.bf16 %v338_v10, %v336_v9  ;;  %v872_v18 = vld [vmem:[#allocation7 + $0x70] sm:$0xff]  ;;  %v886_v22 = vld [vmem:[#allocation7 + $0xe0] sm:$0xff]  ;;  %v885_v24 = vld [vmem:[#allocation7 + $0xd8] sm:$0xff] }
  0x92   : > { %742 = vmatprep.subr.bf16.mxu0 %v1489_v28  ;;  %795 = vmatprep.subr.bf16.mxu1 %v1491_v29  ;;  %v870_v23 = vld [vmem:[#allocation7 + $0x60] sm:$0xff]  ;;  %v869_v25 = vld [vmem:[#allocation7 + $0x58] sm:$0xff]  ;;  %v884_v26 = vld [vmem:[#allocation7 + $0xd0] sm:$0xff] }
  0x93   : > { %v868_v27 = vld [vmem:[#allocation7 + $0x50] sm:$0xff]  ;;  %v883_v28 = vld [vmem:[#allocation7 + $0xc8] sm:$0xff]  ;;  %v874_v46 = vld [vmem:[#allocation7 + $0x80] sm:$0xff] }
  0x94   : > { %v867_v29 = vld [vmem:[#allocation7 + $0x48] sm:$0xff]  ;;  %v858_v47 = vld [vmem:[#allocation7] sm:$0xff]  ;;  %v998_v48 = vld [vmem:[#allocation9 + $0xf8] sm:$0xff] }
  0x95   : > { %743 = vmatpush1.bf16.msra.mxu0 %v1493_v30  ;;  %796 = vmatpush1.bf16.msra.mxu1 %v1494_v31  ;;  %v882_v30 = vld [vmem:[#allocation7 + $0xc0] sm:$0xff]  ;;  %v997_v49 = vld [vmem:[#allocation9 + $0xf0] sm:$0xff]  ;;  %v994_v52 = vld [vmem:[#allocation9 + $0xd8] sm:$0xff] }
  0x96   : > { %744 = vmatprep.subr.bf16.mxu0 %v1495_v32  ;;  %797 = vmatprep.subr.bf16.mxu1 %v1497_v33  ;;  %v866_v31 = vld [vmem:[#allocation7 + $0x40] sm:$0xff]  ;;  %v881_v32 = vld [vmem:[#allocation7 + $0xb8] sm:$0xff]  ;;  %v993_v53 = vld [vmem:[#allocation9 + $0xd0] sm:$0xff] }
  0x97   : > { %v865_v33 = vld [vmem:[#allocation7 + $0x38] sm:$0xff] }
  0x98   : > { %v990_v56 = vld [vmem:[#allocation9 + $0xb8] sm:$0xff] }
  0x99   : > { %745 = vmatpush2.bf16.msra.mxu0 %v1499_v34  ;;  %798 = vmatpush2.bf16.msra.mxu1 %v1500_v35  ;;  %v880_v34 = vld [vmem:[#allocation7 + $0xb0] sm:$0xff] }
  0x9a   : > { %746 = vmatprep.subr.bf16.mxu0 %v1501_v36  ;;  %799 = vmatprep.subr.bf16.mxu1 %v1503_v37  ;;  %v864_v35 = vld [vmem:[#allocation7 + $0x30] sm:$0xff]  ;;  %v879_v36 = vld [vmem:[#allocation7 + $0xa8] sm:$0xff] }
  0x9b   : > { %v863_v37 = vld [vmem:[#allocation7 + $0x28] sm:$0xff] }
  0x9d   : > { %747 = vmatpush2.bf16.msra.mxu0 %v1505_v38  ;;  %800 = vmatpush2.bf16.msra.mxu1 %v1506_v39  ;;  %v878_v38 = vld [vmem:[#allocation7 + $0xa0] sm:$0xff] }
  0x9e   : > { %748 = vmatprep.subr.bf16.mxu0 %v1507_v40  ;;  %801 = vmatprep.subr.bf16.mxu1 %v1509_v41  ;;  %v862_v39 = vld [vmem:[#allocation7 + $0x20] sm:$0xff]  ;;  %v877_v40 = vld [vmem:[#allocation7 + $0x98] sm:$0xff] }
  0x9f   : > { %v861_v41 = vld [vmem:[#allocation7 + $0x18] sm:$0xff] }
  0xa1   : > { %749 = vmatpush2.bf16.msra.mxu0 %v1511_v42  ;;  %802 = vmatpush2.bf16.msra.mxu1 %v1512_v43  ;;  %v876_v42 = vld [vmem:[#allocation7 + $0x90] sm:$0xff] }
  0xa2   : > { %750 = vmatprep.subr.bf16.mxu0 %v1513_v44  ;;  %803 = vmatprep.subr.bf16.mxu1 %v1515_v45  ;;  %v860_v43 = vld [vmem:[#allocation7 + $0x10] sm:$0xff]  ;;  %v875_v44 = vld [vmem:[#allocation7 + $0x88] sm:$0xff] }
  0xa3   : > { %v859_v45 = vld [vmem:[#allocation7 + $0x8] sm:$0xff] }
  0xa5   : > { %751 = vmatpush2.bf16.msra.mxu0 %v1517_v50  ;;  %804 = vmatpush2.bf16.msra.mxu1 %v1518_v51  ;;  %v996_v50 = vld [vmem:[#allocation9 + $0xe8] sm:$0xff]  ;;  %v995_v51 = vld [vmem:[#allocation9 + $0xe0] sm:$0xff] }
  0xa6   : > { %752 = vmatprep.subr.bf16.mxu0 %v1519_v54  ;;  %805 = vmatprep.subr.bf16.mxu1 %v1521_v55  ;;  %v992_v54 = vld [vmem:[#allocation9 + $0xc8] sm:$0xff]  ;;  %v991_v55 = vld [vmem:[#allocation9 + $0xc0] sm:$0xff] }
  0xa9   : > { %753 = vmatpush2.bf16.msra.mxu0 %v1523_v57  ;;  %806 = vmatpush2.bf16.msra.mxu1 %v1524_v58  ;;  %v989_v57 = vld [vmem:[#allocation9 + $0xb0] sm:$0xff]  ;;  %v988_v58 = vld [vmem:[#allocation9 + $0xa8] sm:$0xff] }
  0xaa   : > { %754 = vmatprep.subr.bf16.mxu0 %v1525_v59  ;;  %807 = vmatprep.subr.bf16.mxu1 %v1527_v60 }
  0xad   : > { %755 = vmatpush2.bf16.msra.mxu0 %v1529_v61  ;;  %808 = vmatpush2.bf16.msra.mxu1 %v1530_v62 }
  0xae   : > { %756 = vmatprep.subr.bf16.mxu0 %v1531_v63  ;;  %809 = vmatprep.subr.bf16.mxu1 %v1533_v0 }
  0xb1   : > { %757 = vmatpush2.bf16.msra.mxu0 %v1535_v1  ;;  %810 = vmatpush2.bf16.msra.mxu1 %v1536_v2 }
  0xb2   : > { %758 = vmatprep.subr.bf16.mxu0 %v1537_v7  ;;  %811 = vmatprep.subr.bf16.mxu1 %v1539_v8 }
  0xb5   : > { %759 = vmatpush2.bf16.msra.mxu0 %v1541_v11  ;;  %812 = vmatpush2.bf16.msra.mxu1 %v1542_v12 }
  0xb6   : > { %1327 = vmatprep.subr.mxu0 %v889_v13  ;;  %999 = vmatprep.subr.mxu1 %v998_v48  ;;  %v974_v48 = vld [vmem:[#allocation9 + $0x38] sm:$0xff] }
  0xb8   : > { %761 = vmatmul.mubr.bf16.vlgmr.msra.gmra.mxu0 %v340_v14  ;;  %814 = vmatmul.mubr.bf16.vlgmr.msra.gmra.mxu1 %v340_v14 }
  0xb9   : > { %770 = vmatprep.mubr.bf16.mxu0 %v343_v15  ;;  %823 = vmatprep.mubr.bf16.mxu1 %v343_v15 }
  0xba   : > { %1328 = vmatpush3.msra.mxu0 %v873_v16  ;;  %1000 = vmatpush1.msra.mxu1 %v997_v49  ;;  %v973_v49 = vld [vmem:[#allocation9 + $0x30] sm:$0xff] }
  0xbb   : > { %1329 = vmatprep.subr.mxu0 %v888_v17  ;;  %1001 = vmatprep.subr.mxu1 %v996_v50  ;;  %v972_v50 = vld [vmem:[#allocation9 + $0x28] sm:$0xff] }
  0xbc   : > { %1330 = vmatpush3.msra.mxu0 %v872_v18  ;;  %1002 = vmatpush1.msra.mxu1 %v995_v51  ;;  %v1746_v51 = vmov 0.0  }
  0xbd   : > { %1331 = vmatprep.subr.mxu0 %v887_v19  ;;  %1003 = vmatprep.subr.mxu1 %v994_v52  ;;  %v971_v52 = vld [vmem:[#allocation9 + $0x20] sm:$0xff] }
  0xbe   : > { %1332 = vmatpush3.msra.mxu0 %v871_v20  ;;  %1004 = vmatpush1.msra.mxu1 %v993_v53  ;;  %v970_v53 = vld [vmem:[#allocation9 + $0x18] sm:$0xff] }
  0xbf   : > { %1333 = vmatprep.subr.mxu0 %v886_v22  ;;  %1005 = vmatprep.subr.mxu1 %v992_v54  ;;  %v969_v54 = vld [vmem:[#allocation9 + $0x10] sm:$0xff] }
  0xc0   : > { %771 = vmatmul.mubr.bf16.gmra.mxu0 %v342_v21  ;;  %824 = vmatmul.mubr.bf16.gmra.mxu1 %v342_v21 }
  0xc1   : > { %1334 = vmatpush3.msra.mxu0 %v870_v23  ;;  %1006 = vmatpush1.msra.mxu1 %v991_v55  ;;  %v968_v55 = vld [vmem:[#allocation9 + $0x8] sm:$0xff] }
  0xc2   : > { %1335 = vmatprep.subr.mxu0 %v885_v24  ;;  %1007 = vmatprep.subr.mxu1 %v990_v56  ;;  %v967_v56 = vld [vmem:[#allocation9] sm:$0xff] }
  0xc3   : > { %1336 = vmatpush3.msra.mxu0 %v869_v25  ;;  %1008 = vmatpush1.msra.mxu1 %v989_v57 }
  0xc4   : > { %1337 = vmatprep.subr.mxu0 %v884_v26  ;;  %1009 = vmatprep.subr.mxu1 %v988_v58 }
  0xc5   : > { %1338 = vmatpush3.msra.mxu0 %v868_v27  ;;  %1063 = vmatprep.mubr.f32.mxu1 %v1746_v51 }
  0xc6   : > { %1339 = vmatprep.subr.mxu0 %v883_v28 }
  0xc7   : > { %1340 = vmatpush3.msra.mxu0 %v867_v29 }
  0xc8   : > { %1341 = vmatprep.subr.mxu0 %v882_v30 }
  0xc9   : > { %1342 = vmatpush3.msra.mxu0 %v866_v31 }
  0xca   : > { %1343 = vmatprep.subr.mxu0 %v881_v32 }
  0xcb   : > { %1344 = vmatpush3.msra.mxu0 %v865_v33 }
  0xcc   : > { %1345 = vmatprep.subr.mxu0 %v880_v34 }
  0xcd   : > { %1346 = vmatpush3.msra.mxu0 %v864_v35  ;;  %v987_v35 = vld [vmem:[#allocation9 + $0xa0] sm:$0xff] }
  0xce   : > { %1347 = vmatprep.subr.mxu0 %v879_v36  ;;  %1010 = vmatpush1.msra.mxu1 %v987_v35  ;;  %v986_v36 = vld [vmem:[#allocation9 + $0x98] sm:$0xff] }
  0xcf   : > { %1348 = vmatpush3.msra.mxu0 %v863_v37  ;;  %1011 = vmatprep.subr.mxu1 %v986_v36  ;;  %v985_v37 = vld [vmem:[#allocation9 + $0x90] sm:$0xff] }
  0xd0   : > { %1349 = vmatprep.subr.mxu0 %v878_v38  ;;  %1012 = vmatpush1.msra.mxu1 %v985_v37  ;;  %v984_v38 = vld [vmem:[#allocation9 + $0x88] sm:$0xff] }
  0xd1   : > { %1350 = vmatpush3.msra.mxu0 %v862_v39  ;;  %1013 = vmatprep.subr.mxu1 %v984_v38  ;;  %v983_v39 = vld [vmem:[#allocation9 + $0x80] sm:$0xff] }
  0xd2   : > { %1351 = vmatprep.subr.mxu0 %v877_v40  ;;  %1014 = vmatpush1.msra.mxu1 %v983_v39  ;;  %v982_v40 = vld [vmem:[#allocation9 + $0x78] sm:$0xff] }
  0xd3   : > { %1352 = vmatpush3.msra.mxu0 %v861_v41  ;;  %1015 = vmatprep.subr.mxu1 %v982_v40  ;;  %v981_v41 = vld [vmem:[#allocation9 + $0x70] sm:$0xff] }
  0xd4   : > { %1353 = vmatprep.subr.mxu0 %v876_v42  ;;  %1016 = vmatpush1.msra.mxu1 %v981_v41  ;;  %v980_v42 = vld [vmem:[#allocation9 + $0x68] sm:$0xff] }
  0xd5   : > { %1354 = vmatpush3.msra.mxu0 %v860_v43  ;;  %1017 = vmatprep.subr.mxu1 %v980_v42  ;;  %v979_v43 = vld [vmem:[#allocation9 + $0x60] sm:$0xff] }
  0xd6   : > { %1355 = vmatprep.subr.mxu0 %v875_v44  ;;  %1018 = vmatpush1.msra.mxu1 %v979_v43  ;;  %v978_v44 = vld [vmem:[#allocation9 + $0x58] sm:$0xff] }
  0xd7   : > { %1356 = vmatpush3.msra.mxu0 %v859_v45  ;;  %1019 = vmatprep.subr.mxu1 %v978_v44  ;;  %v977_v45 = vld [vmem:[#allocation9 + $0x50] sm:$0xff] }
  0xd8   : > { %1357 = vmatprep.subr.mxu0 %v874_v46  ;;  %1020 = vmatpush1.msra.mxu1 %v977_v45  ;;  %v976_v46 = vld [vmem:[#allocation9 + $0x48] sm:$0xff] }
  0xd9   : > { %1358 = vmatpush3.msra.mxu0 %v858_v47  ;;  %1021 = vmatprep.subr.mxu1 %v976_v46  ;;  %v975_v47 = vld [vmem:[#allocation9 + $0x40] sm:$0xff] }
  0xda   : > { %1022 = vmatpush1.msra.mxu1 %v975_v47 }
  0xdb   : > { %1023 = vmatprep.subr.mxu1 %v974_v48 }
  0xdc   : > { %1024 = vmatpush1.msra.mxu1 %v973_v49 }
  0xdd   : > { %1025 = vmatprep.subr.mxu1 %v972_v50 }
  0xde   : > { %1026 = vmatpush1.msra.mxu1 %v971_v52 }
  0xdf   : > { %1027 = vmatprep.subr.mxu1 %v970_v53 }
  0xe0   : > { %1028 = vmatpush1.msra.mxu1 %v969_v54 }
  0xe1   : > { %1029 = vmatprep.subr.mxu1 %v968_v55 }
  0xe2   : > { %1030 = vmatpush1.msra.mxu1 %v967_v56 }
 0x178   : > { %v762_v59 = vpop.f32.mrf.mxu0  ;;  %v815_v60 = vpop.f32.mrf.mxu1 }
 0x179   : > { %v834_v61 = vmul.f32 %v762_v59, %v762_v59  ;;  %v842_v62 = vmul.f32 %v815_v60, %v815_v60 }
 0x17a   : > { %v764_v63 = vpop.f32.mrf.mxu0  ;;  %v817_v0 = vpop.f32.mrf.mxu1 }
 0x17b   : > { %v1976_v1 = vadd.f32 %v842_v62, %v834_v61  ;;  %v835_v2 = vmul.f32 %v764_v63, %v764_v63  ;;  %v843_v3 = vmul.f32 %v817_v0, %v817_v0 }
 0x17c   : > { %v766_v4 = vpop.f32.mrf.mxu0  ;;  %v819_v5 = vpop.f32.mrf.mxu1 }
 0x17d   : > { %v1978_v6 = vadd.f32 %v843_v3, %v835_v2  ;;  %v836_v7 = vmul.f32 %v766_v4, %v766_v4  ;;  %v844_v8 = vmul.f32 %v819_v5, %v819_v5 }
 0x17e   : > { %v768_v9 = vpop.f32.mrf.mxu0  ;;  %v821_v10 = vpop.f32.mrf.mxu1 }
 0x17f   : > { %v1980_v11 = vadd.f32 %v844_v8, %v836_v7  ;;  %v837_v12 = vmul.f32 %v768_v9, %v768_v9  ;;  %v845_v13 = vmul.f32 %v821_v10, %v821_v10 }
 0x180   : > { %v772_v14 = vpop.f32.mrf.mxu0  ;;  %v825_v15 = vpop.f32.mrf.mxu1 }
 0x181   : > { %v1982_v16 = vadd.f32 %v845_v13, %v837_v12  ;;  %v838_v17 = vmul.f32 %v772_v14, %v772_v14  ;;  %v846_v18 = vmul.f32 %v825_v15, %v825_v15 }
 0x182   : > { %v774_v19 = vpop.f32.mrf.mxu0  ;;  %v827_v20 = vpop.f32.mrf.mxu1 }
 0x183   : > { %v839_v21 = vmul.f32 %v774_v19, %v774_v19  ;;  %v847_v22 = vmul.f32 %v827_v20, %v827_v20  ;;  %v854_v26 = vadd.f32 %v846_v18, %v838_v17 }
 0x184   : > { %v776_v23 = vpop.f32.mrf.mxu0  ;;  %v829_v24 = vpop.f32.mrf.mxu1 }
 0x185   : > { %v855_v25 = vadd.f32 %v847_v22, %v839_v21  ;;  %v840_v27 = vmul.f32 %v776_v23, %v776_v23  ;;  %v848_v28 = vmul.f32 %v829_v24, %v829_v24 }
 0x186   : > { %v778_v29 = vpop.f32.mrf.mxu0  ;;  %v831_v30 = vpop.f32.mrf.mxu1 }
 0x187   : > { %v841_v31 = vmul.f32 %v778_v29, %v778_v29  ;;  %v849_v32 = vmul.f32 %v831_v30, %v831_v30  ;;  %954 = vmatprep.mubr.f32.mxu0 %v855_v25  ;;  %v856_v34 = vadd.f32 %v848_v28, %v840_v27 }
 0x188   : > { %955 = vmatmul.mubr.f32.vlgmr.msra.gmra.mxu0 %v854_v26 }
 0x189   : > { %v857_v33 = vadd.f32 %v849_v32, %v841_v31 }
 0x18b   : > { %959 = vmatprep.mubr.f32.mxu0 %v857_v33 }
 0x18c   : > { %960 = vmatmul.mubr.f32.gmra.mxu0 %v856_v34 }
 0x248   : > { %v1359_v57 = vpop.f32.mrf.mxu0 }
 0x24a   : > { %v1360_v58 = vpop.f32.mrf.mxu0 }
 0x24b   : > { %v1361_v59 = vadd.f32 %v1360_v58, %v1359_v57 }
 0x24c   : > { %v1362_v60 = vpop.f32.mrf.mxu0 }
 0x24d   : > { %v957_v61 = vadd.f32 0.001, %v1361_v59 }
 0x24e   : > { %v1363_v62 = vpop.f32.mrf.mxu0 }
 0x24f   : > { %1543 = vrcp.f32 %v957_v61  ;;  %v1364_v63 = vadd.f32 %v1363_v62, %v1362_v60 }
 0x251   : > { %v962_v0 = vadd.f32 0.001, %v1364_v63 }
 0x253   : > { %1545 = vrcp.f32 %v962_v0 }
 0x25c   : > { %v1544_v2 = vpop.eup %1543 }
 0x25d   : > { %1064 = vmatmul.mubr.f32.vlgmr.msra.gmra.mxu1 %v1544_v2 }
 0x25e   : > { %1069 = vmatprep.mubr.f32.mxu1 %v1746_v51 }
 0x260   : > { %v1546_v3 = vpop.eup %1545 }
 0x261   : > { %1070 = vmatmul.mubr.f32.gmra.mxu1 %v1546_v3 }
 0x31d   : > { %v1065_v4 = vpop.f32.mrf.mxu1 }
 0x31e   : > { %1547 = vrsqrt.f32 %v1065_v4  ;;  %vm1078_vm0 = vcmp.eq.f32.partialorder %v1065_v4, inf  ;;  %v1081_v13 = vand.u32 2147483648, %v1065_v4  ;;  %vm1080_vm1 = vcmp.eq.f32.partialorder %v1065_v4, 0.0 }
 0x31f   : > { %v1067_v5 = vpop.f32.mrf.mxu1 }
 0x320   : > { %1549 = vrsqrt.f32 %v1067_v5  ;;  %vm1085_vm2 = vcmp.eq.f32.partialorder %v1067_v5, inf  ;;  %v1088_v18 = vand.u32 2147483648, %v1067_v5  ;;  %vm1087_vm3 = vcmp.eq.f32.partialorder %v1067_v5, 0.0 }
 0x321   : > { %v1071_v7 = vpop.f32.mrf.mxu1 }
 0x322   : > { %1551 = vrsqrt.f32 %v1071_v7  ;;  %vm1092_vm4 = vcmp.eq.f32.partialorder %v1071_v7, inf  ;;  %v1095_v25 = vand.u32 2147483648, %v1071_v7  ;;  %vm1094_vm5 = vcmp.eq.f32.partialorder %v1071_v7, 0.0 }
 0x323   : > { %v1073_v8 = vpop.f32.mrf.mxu1 }
 0x324   : > { %1553 = vrsqrt.f32 %v1073_v8  ;;  %vm1099_vm6 = vcmp.eq.f32.partialorder %v1073_v8, inf  ;;  %vm1101_vm7 = vcmp.eq.f32.partialorder %v1073_v8, 0.0  ;;  %v1102_v30 = vand.u32 2147483648, %v1073_v8 }
 0x32b   : > { %v1548_v9 = vpop.eup %1547 }
 0x32c   : > { %v1077_v10 = vmul.f32 %v1548_v9, %v1065_v4 }
 0x32d   : > { %v1550_v12 = vpop.eup %1549 }
 0x32e   : > { %v1084_v14 = vmul.f32 %v1550_v12, %v1067_v5  ;;  %v1079_v15 = vsel %vm1078_vm0, %v1065_v4, %v1077_v10 }
 0x32f   : > { %v1552_v17 = vpop.eup %1551  ;;  %v1082_v19 = vsel %vm1080_vm1, %v1081_v13, %v1079_v15 }
 0x330   : > { %v1091_v20 = vmul.f32 %v1552_v17, %v1071_v7  ;;  %v1086_v21 = vsel %vm1085_vm2, %v1067_v5, %v1084_v14  ;;  %v1104_v22 = vmul.f32 %v1082_v19, %v1976_v1 }
 0x331   : > { %v1554_v23 = vpop.eup %1553  ;;  %v1089_v24 = vsel %vm1087_vm3, %v1088_v18, %v1086_v21 }
 0x332   : > { %v1098_v26 = vmul.f32 %v1554_v23, %v1073_v8  ;;  %v1093_v27 = vsel %vm1092_vm4, %v1071_v7, %v1091_v20  ;;  %v1105_v28 = vmul.f32 %v1089_v24, %v1978_v6  ;;  %v1108_v33 = vand.u32 2147483647, %v1104_v22 }
 0x333   : > { %v1096_v29 = vsel %vm1094_vm5, %v1095_v25, %v1093_v27 }
 0x334   : > { %v1100_v31 = vsel %vm1099_vm6, %v1073_v8, %v1098_v26  ;;  %v1106_v32 = vmul.f32 %v1096_v29, %v1980_v11  ;;  %v1109_v34 = vand.u32 2147483647, %v1105_v28 }
 0x335   : > { %v1103_v35 = vsel %vm1101_vm7, %v1102_v30, %v1100_v31 }
 0x336   : > { %v1107_v1 = vmul.f32 %v1103_v35, %v1982_v16  ;;  %v1110_v36 = vand.u32 2147483647, %v1106_v32  ;;  %v1112_v37 = vadd.f32 %v1109_v34, %v1108_v33 }
 0x338   : > { %v1111_v38 = vand.u32 2147483647, %v1107_v1  ;;  %v1113_v39 = vadd.f32 %v1112_v37, %v1110_v36 }
 0x33a   : > { %v1114_v40 = vadd.f32 %v1113_v39, %v1111_v38 }
 0x33c   : > { %1115 = vadd.xlane.f32.xlu0 %v1114_v40 }
 0x3c5   : > { %v1116_v6 = vpop.xlane.xlu0 %1115 }
 0x3c6   : > { %v1117_v41 = vrot.slane %v1116_v6, 4 }
 0x3c8   : > { %v1118_v42 = vadd.f32 %v1117_v41, %v1116_v6 }
 0x3ca   : > { %v1119_v43 = vrot.slane %v1118_v42, 2 }
 0x3cc   : > { %v1120_v44 = vadd.f32 %v1119_v43, %v1118_v42 }
 0x3ce   : > { %v1121_v45 = vrot.slane %v1120_v44, 1 }
 0x3d0   : > { %v1122_v11 = vadd.f32 %v1121_v45, %v1120_v44 }
 0x3d2   : > { %1365 = vpush %v1122_v11 }
 0x403   : > { %s1366_s25 = spop %1365 }
 0x404   : > { %v1124_v16 = vstv %s1366_s25 }
 0x405   : > { %1126 = vst.msk [vmem:[%s327_s7] sm:$0x1] %vm1125_vm8, %v1124_v16 }
 0x406 PF: > { %p19_p0 = scmp.ge.s32.totalorder %s1842_s17, 4   ;;  %s2023_s18 = smov %s1727_s19 }
 0x407   : > { %s2024_s19 = smov %s1731_s20  ;;  %s2025_s20 = smov %s1863_s27 }
 0x408   : > { %s2026_s21 = smov %s1842_s17  ;;  %21 = sbr.rel (!%p19_p0) target bundleno = 6 (0x6), region = 105 }
 0x40d   :  { %1144 = vsyncpa [#allocation3], 1 }
 0x40e   :  { %1146 = vsyncpa [#allocation3 + $0x1], 1 }
 0x40f   :  { %1147 = vsyncpa [#allocation5], 1 }
 0x410   :  { %1149 = vsyncpa [#allocation5 + $0x1], 1 }
 0x411   :  { %1150 = vsyncpa [#allocation8], 1 }

</bundles_post_ra>
